<compile_context>
chip_gen: v7x
topology: tpu7x:2x2x1
jax: 0.10.0
libtpu: 0.0.40
codegen_flags: <defaults>
</compile_context>

<pallas_src>
import functools

import jax
import jax.numpy as jnp
from jax.experimental import pallas as pl
from jax.experimental.pallas import tpu as pltpu


# ---------------------------------------------------------------------------
# Kernels
# ---------------------------------------------------------------------------

def _resident_kernel(x_ref, w_ref, b_ref, o_ref, *, compute_dtype):
    # x_ref: (tm, Kp) compute_dtype; w_ref: (Kp, tn) stored dtype (f32),
    # cast in-kernel so HBM only ever reads the weight once in its stored
    # dtype; b_ref: (1, tn) f32; o_ref: (tm, tn) out dtype.
    acc = jnp.dot(
        x_ref[...],
        w_ref[...].astype(compute_dtype),
        preferred_element_type=jnp.float32,
    )
    o_ref[...] = (acc + b_ref[...]).astype(o_ref.dtype)


def _streaming_kernel(x_ref, w_ref, b_ref, o_ref, acc_ref, *, compute_dtype):
    # 3-D grid (M, N, K), K last.  acc_ref: (tm, tn) f32 scratch.
    k = pl.program_id(2)

    @pl.when(k == 0)
    def _init():
        acc_ref[...] = jnp.zeros_like(acc_ref)

    acc_ref[...] += jnp.dot(
        x_ref[...],
        w_ref[...].astype(compute_dtype),
        preferred_element_type=jnp.float32,
    )

    @pl.when(k == pl.num_programs(2) - 1)
    def _finalize():
        # Single f32 epilogue on the last K step only.
        o_ref[...] = (acc_ref[...] + b_ref[...]).astype(o_ref.dtype)


# ---------------------------------------------------------------------------
# Wrapper
# ---------------------------------------------------------------------------

def _round_up(x, m):
    return ((x + m - 1) // m) * m


def _cdiv(a, b):
    return (a + b - 1) // b


# Below these sizes, a plain XLA dot wins (launch + pad/cast overhead
# dominates the handful of FLOPs of a predictor-sized head).
_PALLAS_MIN_DIM = 128
_PALLAS_MIN_BATCH = 64
_PALLAS_MIN_FLOPS = 256 * 1000 * 1000


def _default_vmem_budget_bytes():
    """Generation-aware working-set budget (conservative fallback for v7x)."""
    try:
        cap = int(getattr(pltpu.get_tpu_info(), "vmem_capacity_bytes", 0))
        if cap > 0:
            # ~45% of physical VMEM, capped: v7x (64 MiB) -> ~24 MiB,
            # v5e/v6e (128 MiB) -> ~56 MiB.
            return int(max(16 << 20, min(cap * 45 // 100, 56 << 20)))
    except Exception:
        pass
    return 24 << 20   # safe on every generation


def linear_matrix_predictor(
    x,
    weight_t,
    bias,
    output_rows,
    output_cols,
    *,
    compute_dtype=jnp.bfloat16,   # NOTE: bf16 MXU path; pass jnp.float32 for exact f32
    out_dtype=None,               # default: x.dtype (module semantics)
    tm_cap=512,
    tn_cap=512,
    tk_cap=2048,
    force_pallas=False,
    allow_weight_resident=True,
    vmem_budget_bytes=None,
):
    """x: (B, input_dim); weight_t: (input_dim, rows*cols) (transposed vs.
    PyTorch's (out, in) storage); bias: (rows*cols,)."""
    B, D_in = x.shape
    D_out = output_rows * output_cols
    assert weight_t.shape == (D_in, D_out)
    assert bias.shape == (D_out,)
    out_dtype = x.dtype if out_dtype is None else out_dtype

    # --- Size gate: tiny heads / tiny batches go straight to XLA. ----------
    flops = 2 * B * D_in * D_out
    if not force_pallas and (
        D_in < _PALLAS_MIN_DIM
        or D_out < _PALLAS_MIN_DIM
        or B < _PALLAS_MIN_BATCH
        or flops < _PALLAS_MIN_FLOPS
    ):
        out = (
            jnp.dot(x, weight_t, preferred_element_type=jnp.float32)
            + bias.astype(jnp.float32)
        ).astype(out_dtype)
        return out.reshape(-1, output_rows, output_cols)

    budget = (
        _default_vmem_budget_bytes()
        if vmem_budget_bytes is None
        else int(vmem_budget_bytes)
    )

    x_item = jnp.dtype(compute_dtype).itemsize
    w_item = jnp.dtype(weight_t.dtype).itemsize
    o_item = jnp.dtype(out_dtype).itemsize
    sub = 16 if x_item < 4 else 8   # bf16 packs 16 rows per sublane group

    tm = min(tm_cap, _round_up(B, sub))
    tn = min(tn_cap, _round_up(D_out, 128))   # lane-dense output (>= 128)

    # =======================================================================
    # Path 1: K-resident — whole reduction dim in one block.  Grid is
    # (N_blocks, M_blocks) with N OUTER, so each weight column block is
    # DMA'd once and reused across all M steps.
    # =======================================================================
    resident = None
    if allow_weight_resident:
        Kp_r = _round_up(D_in, 128)

        def _resident_ws(tm_, tn_):
            return (
                2 * tm_ * Kp_r * x_item      # x blocks (double-buffered)
                + 2 * Kp_r * tn_ * w_item    # weight blocks (double-buffered)
                + Kp_r * tn_ * x_item        # in-kernel weight cast temp
                + 2 * tm_ * tn_ * o_item     # output blocks
                + 2 * tn_ * 4                # bias blocks (f32)
            )

        rtm, rtn = tm, tn
        while _resident_ws(rtm, rtn) > budget:
            if rtn > 128:
                rtn = max(128, _round_up(rtn // 2, 128))
            elif rtm > sub:
                rtm = max(sub, _round_up(rtm // 2, sub))
            else:
                break
        if _resident_ws(rtm, rtn) <= budget:
            resident = (rtm, rtn, Kp_r)

    if resident is not None:
        tm, tn, Kp = resident

        # Megacore guard: keep a parallel grid axis with >= 2 steps (v7x).
        if _cdiv(B, tm) * _cdiv(D_out, tn) == 1:
            if tm >= 2 * sub:
                tm = _round_up(tm // 2, sub)
            elif tn >= 256:
                tn = _round_up(tn // 2, 128)

        Bp = _round_up(B, tm)
        Np = _round_up(D_out, tn)
        grid = (Np // tn, Bp // tm)   # j (N blocks) outer, i (M blocks) inner

        x_p = x.astype(compute_dtype)
        if (Bp, Kp) != (B, D_in):
            x_p = jnp.pad(x_p, ((0, Bp - B), (0, Kp - D_in)))
        w_p = weight_t                 # keep stored dtype; cast in-kernel
        if (Kp, Np) != (D_in, D_out):
            w_p = jnp.pad(w_p, ((0, Kp - D_in), (0, Np - D_out)))
        b_p = bias.astype(jnp.float32)
        if Np != D_out:
            b_p = jnp.pad(b_p, (0, Np - D_out))
        b_p = b_p.reshape(1, Np)

        ws = (2 * tm * Kp * x_item + 2 * Kp * tn * w_item + Kp * tn * x_item
              + 2 * tm * tn * o_item + 2 * tn * 4)
        vmem_limit = int(min(max(int(ws * 1.6) + (2 << 20), 32 << 20), 100 << 20))

        cost = pl.CostEstimate(
            flops=2 * Bp * Kp * Np,
            transcendentals=0,
            bytes_accessed=(
                Bp * Kp * x_item + Kp * Np * w_item + Np * 4 + Bp * Np * o_item
            ),
        )

        out = pl.pallas_call(
            functools.partial(_resident_kernel, compute_dtype=compute_dtype),
            out_shape=jax.ShapeDtypeStruct((Bp, Np), out_dtype),
            grid_spec=pltpu.PrefetchScalarGridSpec(
                num_scalar_prefetch=0,
                grid=grid,
                in_specs=[
                    pl.BlockSpec((tm, Kp), lambda j, i: (i, 0)),
                    # Weight / bias depend on the OUTER axis only -> DMA'd
                    # exactly once per column block, resident across M steps.
                    pl.BlockSpec((Kp, tn), lambda j, i: (0, j)),
                    pl.BlockSpec((1, tn), lambda j, i: (0, j)),
                ],
                out_specs=pl.BlockSpec((tm, tn), lambda j, i: (i, j)),
            ),
            compiler_params=pltpu.CompilerParams(
                dimension_semantics=("parallel", "parallel"),
                vmem_limit_bytes=vmem_limit,
            ),
            cost_estimate=cost,
        )(x_p, w_p, b_p)

        out = out[:B, :D_out]
        return out.reshape(-1, output_rows, output_cols)

    # =======================================================================
    # Path 2: streaming 3-D grid (M, N, K), K last, f32 VMEM accumulator.
    # Used only when the reduction dim is too large for the resident path.
    # =======================================================================
    tk = min(tk_cap, _round_up(D_in, 128))

    def _stream_ws(tm_, tn_, tk_):
        return (
            2 * tm_ * tk_ * x_item       # x blocks
            + 2 * tk_ * tn_ * w_item     # weight blocks (stored dtype)
            + tk_ * tn_ * x_item         # in-kernel weight cast temp
            + tm_ * tn_ * 4              # f32 accumulator scratch
            + 2 * tm_ * tn_ * o_item     # output blocks
            + 2 * tn_ * 4                # bias blocks
        )

    while _stream_ws(tm, tn, tk) > budget:
        if tk > 128:
            tk = max(128, _round_up(tk // 2, 128))
        elif tn > 128:
            tn = max(128, _round_up(tn // 2, 128))
        elif tm > sub:
            tm = max(sub, _round_up(tm // 2, sub))
        else:
            break

    # Megacore guard (v7x): keep one parallel axis with >= 2 steps.
    if _cdiv(B, tm) * _cdiv(D_out, tn) == 1:
        if tm >= 2 * sub:
            tm = _round_up(tm // 2, sub)
        elif tn >= 256:
            tn = _round_up(tn // 2, 128)

    Bp = _round_up(B, tm)
    Np = _round_up(D_out, tn)
    Kp = _round_up(D_in, tk)
    grid = (Bp // tm, Np // tn, Kp // tk)

    # Zero K-padding contributes 0 to the dot; padded M/N sliced off below.
    x_p = x.astype(compute_dtype)
    if (Bp, Kp) != (B, D_in):
        x_p = jnp.pad(x_p, ((0, Bp - B), (0, Kp - D_in)))
    w_p = weight_t                     # keep stored dtype; cast in-kernel
    if (Kp, Np) != (D_in, D_out):
        w_p = jnp.pad(w_p, ((0, Kp - D_in), (0, Np - D_out)))
    b_p = bias.astype(jnp.float32)
    if Np != D_out:
        b_p = jnp.pad(b_p, (0, Np - D_out))
    b_p = b_p.reshape(1, Np)

    ws = _stream_ws(tm, tn, tk)
    vmem_limit = int(min(max(int(ws * 1.6) + (2 << 20), 32 << 20), 100 << 20))

    cost = pl.CostEstimate(
        flops=2 * Bp * Kp * Np,
        transcendentals=0,
        bytes_accessed=(
            Bp * Kp * x_item + Kp * Np * w_item + Np * 4 + Bp * Np * o_item
        ),
    )

    # TODO(synk): if v5e profiling shows exposed weight DMA at small tm, add
    # pipeline_mode=pl.Buffered(3) on the weight BlockSpec only.
    out = pl.pallas_call(
        functools.partial(_streaming_kernel, compute_dtype=compute_dtype),
        out_shape=jax.ShapeDtypeStruct((Bp, Np), out_dtype),
        grid_spec=pltpu.PrefetchScalarGridSpec(
            num_scalar_prefetch=0,
            grid=grid,
            in_specs=[
                pl.BlockSpec((tm, tk), lambda i, j, k: (i, k)),
                pl.BlockSpec((tk, tn), lambda i, j, k: (k, j)),
                # Bias depends on N only -> resident across M/K steps.
                pl.BlockSpec((1, tn), lambda i, j, k: (0, j)),
            ],
            out_specs=pl.BlockSpec((tm, tn), lambda i, j, k: (i, j)),
            scratch_shapes=[pltpu.VMEM((tm, tn), jnp.float32)],
        ),
        compiler_params=pltpu.CompilerParams(
            dimension_semantics=("parallel", "parallel", "arbitrary"),
            vmem_limit_bytes=vmem_limit,
        ),
        cost_estimate=cost,
    )(x_p, w_p, b_p)

    out = out[:B, :D_out]
    return out.reshape(-1, output_rows, output_cols)


# ---------------------------------------------------------------------------
# Demo / self-test
# ---------------------------------------------------------------------------

if __name__ == "__main__":
    key = jax.random.PRNGKey(0)
    ks = jax.random.split(key, 9)

    def _bf16_ref(x, w, b, rows, cols):
        xf = x.astype(jnp.bfloat16).astype(jnp.float32)
        wf = w.astype(jnp.bfloat16).astype(jnp.float32)
        return (jnp.dot(xf, wf) + b).reshape(-1, rows, cols)

    # ---------------------------------------------------------------------
    # 1) K-resident Pallas path (with non-aligned dims -> exercises padding).
    # ---------------------------------------------------------------------
    B1, K1, R1, C1 = 100, 300, 10, 26
    D1 = R1 * C1
    bnd1 = 1.0 / (K1 ** 0.5)
    x1 = jax.random.normal(ks[0], (B1, K1), dtype=jnp.float32)
    w1 = jax.random.uniform(ks[1], (K1, D1), minval=-bnd1, maxval=bnd1,
                            dtype=jnp.float32)
    b1 = jax.random.uniform(ks[2], (D1,), minval=-bnd1, maxval=bnd1,
                            dtype=jnp.float32)
    out1 = linear_matrix_predictor(x1, w1, b1, R1, C1, force_pallas=True)
    out1 = jax.block_until_ready(out1)
    ref1 = _bf16_ref(x1, w1, b1, R1, C1)
    assert out1.shape == (B1, R1, C1)
    assert jnp.allclose(out1, ref1, atol=2e-3, rtol=2e-3)

    # ---------------------------------------------------------------------
    # 2) Streaming 3-D path: resident disabled + tiny VMEM budget forces the
    #    tiled (M, N, K) grid with the f32 accumulator (4 K steps here).
    # ---------------------------------------------------------------------
    B2, K2, R2, C2 = 64, 1024, 16, 16
    D2 = R2 * C2
    bnd2 = 1.0 / (K2 ** 0.5)
    x2 = jax.random.normal(ks[3], (B2, K2), dtype=jnp.float32)
    w2 = jax.random.uniform(ks[4], (K2, D2), minval=-bnd2, maxval=bnd2,
                            dtype=jnp.float32)
    b2 = jax.random.uniform(ks[5], (D2,), minval=-bnd2, maxval=bnd2,
                            dtype=jnp.float32)
    out2 = linear_matrix_predictor(
        x2, w2, b2, R2, C2,
        force_pallas=True, allow_weight_resident=False,
        vmem_budget_bytes=1 << 20,
    )
    out2 = jax.block_until_ready(out2)
    ref2 = _bf16_ref(x2, w2, b2, R2, C2)
    assert out2.shape == (B2, R2, C2)
    assert jnp.allclose(out2, ref2, atol=2e-3, rtol=2e-3)

    # ---------------------------------------------------------------------
    # 3) Original toy shapes (2 x 32 -> 4 x 8): size-gated to plain XLA.
    # ---------------------------------------------------------------------
    B3, K3, R3, C3 = 2, 32, 4, 8
    D3 = R3 * C3
    bnd3 = 1.0 / (K3 ** 0.5)
    x3 = jax.random.normal(ks[6], (B3, K3), dtype=jnp.float32)
    w3 = jax.random.uniform(ks[7], (K3, D3), minval=-bnd3, maxval=bnd3,
                            dtype=jnp.float32)
    b3 = jax.random.uniform(ks[8], (D3,), minval=-bnd3, maxval=bnd3,
                            dtype=jnp.float32)
    out3 = linear_matrix_predictor(x3, w3, b3, R3, C3)
    out3 = jax.block_until_ready(out3)
    ref3 = (x3 @ w3 + b3).reshape(-1, R3, C3)
    assert out3.shape == (B3, R3, C3)
    assert jnp.allclose(out3, ref3, atol=1e-5, rtol=1e-5)

    print("KERNEL_OK")
</pallas_src>

<mosaic_0001>
module attributes {stable_mosaic.version = 11 : i64} {
  func.func @_resident_kernel(%arg0: i32, %arg1: i32, %arg2: memref<64x384xbf16, #tpu.memory_space<vmem>>, %arg3: memref<384x384xf32, #tpu.memory_space<vmem>>, %arg4: memref<1x384xf32, #tpu.memory_space<vmem>>, %arg5: memref<64x384xf32, #tpu.memory_space<vmem>>) attributes {dimension_semantics = [#tpu.dimension_semantics<parallel>, #tpu.dimension_semantics<parallel>], iteration_bounds = array<i64: 1, 2>, scalar_prefetch = 0 : i64, scratch_operands = 0 : i64, tpu.core_type = #tpu.core_type<tc>, window_params = [{transform_indices = @transform_0, window_bounds = array<i64: 64, 384>}, {transform_indices = @transform_1, window_bounds = array<i64: 384, 384>}, {transform_indices = @transform_2, window_bounds = array<i64: 1, 384>}, {transform_indices = @transform_3, window_bounds = array<i64: 64, 384>}]} {
    %c0 = arith.constant 0 : index
    %c0_0 = arith.constant 0 : index
    %0 = vector.load %arg2[%c0, %c0_0] : memref<64x384xbf16, #tpu.memory_space<vmem>>, vector<64x384xbf16>
    %c0_1 = arith.constant 0 : index
    %c0_2 = arith.constant 0 : index
    %1 = vector.load %arg3[%c0_1, %c0_2] : memref<384x384xf32, #tpu.memory_space<vmem>>, vector<384x384xf32>
    %2 = arith.truncf %1 : vector<384x384xf32> to vector<384x384xbf16>
    %cst = arith.constant dense<0.000000e+00> : vector<64x384xf32>
    %3 = tpu.matmul %0, %2, %cst {dimension_numbers = #tpu.dot_dimension_numbers<[1], [0], [0], [1], [0, 0, 1, 1], [], []>} : vector<64x384xbf16>, vector<384x384xbf16>, vector<64x384xf32> -> vector<64x384xf32>
    %c0_3 = arith.constant 0 : index
    %c0_4 = arith.constant 0 : index
    %4 = vector.load %arg4[%c0_3, %c0_4] : memref<1x384xf32, #tpu.memory_space<vmem>>, vector<1x384xf32>
    %5 = vector.broadcast %4 : vector<1x384xf32> to vector<64x384xf32>
    %6 = arith.addf %3, %5 : vector<64x384xf32>
    %c0_5 = arith.constant 0 : index
    %c0_6 = arith.constant 0 : index
    %7 = vector.load %arg5[%c0_5, %c0_6] : memref<64x384xf32, #tpu.memory_space<vmem>>, vector<64x384xf32>
    tpu.vector_store %arg5[%c0_5, %c0_6], %6 {strides = array<i32>} : memref<64x384xf32, #tpu.memory_space<vmem>>, vector<64x384xf32>,
    return
  }
  func.func @transform_0(%arg0: i32, %arg1: i32) -> (i32, i32) {
    %c0_i32 = arith.constant 0 : i32
    %c0_i32_0 = arith.constant 0 : i32
    return %arg1, %c0_i32 : i32, i32
  }
  func.func @transform_1(%arg0: i32, %arg1: i32) -> (i32, i32) {
    %c0_i32 = arith.constant 0 : i32
    %c0_i32_0 = arith.constant 0 : i32
    return %c0_i32, %arg0 : i32, i32
  }
  func.func @transform_2(%arg0: i32, %arg1: i32) -> (i32, i32) {
    %c0_i32 = arith.constant 0 : i32
    %c0_i32_0 = arith.constant 0 : i32
    return %c0_i32, %arg0 : i32, i32
  }
  func.func @transform_3(%arg0: i32, %arg1: i32) -> (i32, i32) {
    %c0_i32 = arith.constant 0 : i32
    return %arg1, %arg0 : i32, i32
  }
}

</mosaic_0001>

<bundles_post_ra>
// kernel: tpu_custom_call.1
= control target key start
LH: loop header
LB: loop body
LE: loop exit
PB: predicated region body
PF: predicated region fallthrough
CT: control target
= control target key end

     0   :  { %8 = vsyncpa [#allocation3], 0  ;;  %s1756_s0 = inlined_call_operand.hbm [shape: bf16[128,384], index: 0, kind: input, shape index: {}]   ;;  %s1757_s1 = inlined_call_operand.hbm [shape: f32[384,384], index: 1, kind: input, shape index: {}]   ;;  %s1758_s2 = inlined_call_operand.vmem [shape: f32[1,384], index: 2, kind: input, shape index: {}]   ;;  %s1759_s3 = inlined_call_operand.hbm [shape: f32[128,384], index: 3, kind: output, shape index: {}]  }
   0x1   :  { %10 = vsyncpa [#allocation3 + $0x1], 0 }
   0x2   :  { %11 = vsyncpa [#allocation6], 0 }
   0x3   :  { %12 = vsyncpa [#allocation4], 0 }
   0x4   :  { %14 = vsyncpa [#allocation4 + $0x1], 0  ;;  %s1418_s12 = smov 0   ;;  %s1420_s13 = smov 0  }
   0x5   :  { %s1422_s14 = smov 0   ;;  %s1424_s15 = smov 0  }
   0x6   :  { %s1426_s16 = smov 0   ;;  %s1428_s17 = smov 0  }
   0x7 LB: > { %s989_s18 = sadd.s32 4294967295, %s1386_s17   ;;  %s990_s19 = sadd.s32 4294967294, %s1386_s17   ;;  %s1386_s17 = sphi %s1428_s17, %s20_s17   ;;  %s1382_s16 = sphi %s1426_s16, %s1782_s16   ;;  %s1378_s15 = sphi %s1424_s15, %s1781_s15   ;;  %s1374_s14 = sphi %s1422_s14, %s1780_s14   ;;  %s1370_s13 = sphi %s1420_s13, %s1779_s13   ;;  %s1366_s12 = sphi %s1418_s12, %s1778_s12  }
   0x8   : > { %p52_p0 = scmp.ne.s32.totalorder %s1370_s13, %s1366_s12  ;;  %p1452_p1 = scmp.eq.s32.totalorder %s989_s18, 0 }
   0x9   : > { %p1456_p2 = scmp.eq.s32.totalorder %s989_s18, 1  ;;  %p136_p3 = scmp.eq.s32.totalorder %s990_s19, 1 }
   0xa   : > { %s1764_s20 = scalar_select %p1452_p1, 1, 0 }
   0xb   : > { %s1765_s21 = scalar_select %p1456_p2, 1, 0 }
   0xc   : > { %p1462_p4 = por %p1452_p1, %p52_p0  ;;  %p991_p5 = scmp.ge.s32.totalorder %s1386_s17, 1 }
   0xd   : > { %p1467_p6 = por %p136_p3, %p52_p0  ;;  %p143_p7 = scmp.lt.s32.totalorder %s1386_s17, 3 }
   0xe   : > { %s1766_s22 = scalar_select %p1462_p4, 1, 0 }
   0xf   : > { %s1767_s23 = scalar_select %p1467_p6, 1, 0 }
  0x10   : > { %p1472_p8 = pnand %p991_p5, %p143_p7  ;;  %s1388_s25 = smov [#allocation5]  }
  0x11   : > { %s158_s26 = sshll.u32 %s1388_s25, 4  ;;  %s29_s28 = sadd.s32 1, %s1382_s16  ;;  %s159_s26 = int_to_ptr.vmem [resolvable:$true] %s158_s26 }
  0x12   : > { %s1768_s24 = scalar_select %p1472_p8, 1, 0 }
  0x13   : > { %p1154_p9 = pneg %p1472_p8  ;;  %s1242_s4 = scalar_lea.hbm %s1757_s1, 18432 }
  0x14   : > { %p1243_p12 = scmp.ne.s32.totalorder %s1757_s1, %s1242_s4  ;;  %p1249_p5 = scmp.lt.u32.totalorder %s1242_s4, %s1757_s1 }
  0x15   : > { %p1481_p11 = pnand %p1154_p9, %p1452_p1 }
  0x17   : > { %p1244_p13 = pneg %p1481_p11 }
  0x19   : > { %p1245_p0 = pnand %p1244_p13, %p1243_p12 }
  0x1b   : > { %p1246_p3 = pneg %p1245_p0 }
  0x1d   : > { %p1251_p7 = pnand %p1249_p5, %p1246_p3 }
  0x1f   : > { %1254 = shalt.err (!%p1251_p7)
}
  0x20   : > { %s1255_s9 = scalar_lea.vmem %s159_s26, 18432  ;;  %p1263_p1 = scmp.lt.s32.totalorder %s159_s26, %s159_s26 }
  0x21   : > { %p1256_p9 = scmp.ne.s32.totalorder %s159_s26, %s1255_s9  ;;  %p1264_p4 = scmp.lt.s32.totalorder %s1255_s9, %s1255_s9 }
  0x23   : > { %p1258_p10 = pnand %p1256_p9, %p1244_p13  ;;  %p1265_p8 = por %p1264_p4, %p1263_p1 }
  0x25   : > { %p1259_p6 = pneg %p1258_p10 }
  0x27   : > { %p1266_p2 = pnand %p1265_p8, %p1259_p6 }
  0x29   : > { %1269 = shalt.err (!%p1266_p2)
}
  0x2a   : > { %s1389_s10 = smov 384   ;;  %s1390_s11 = smov 24  }
  0x2b   : > { %1157 = dma.hbm_to_vmem [thread:$0]  (!%p1481_p11), %s1757_s1, 18432, %s159_s26, [#allocation6], %s1389_s10, %s1389_s10, %s1390_s11  }
  0x2c   : > { %p30_p1 = scmp.ge.s32.totalorder %s29_s28, 2  ;;  %s39_s25 = sadd.s32 1, %s1374_s14 }
  0x2d   : > { %p46_p2 = scmp.ne.s32.totalorder %s1374_s14, %s1370_s13  ;;  %p47_p4 = scmp.eq.s32.totalorder %s1386_s17, 0 }
  0x2e   : > { %s1784_s28 = smov (%p30_p1, %s29_s28), 0  ;;  %p1770_p8 = scmp.ne.s32.totalorder %s1765_s21, 0 }
  0x2f   : > { %p48_p6 = por %p47_p4, %p46_p2  ;;  %s36_s30 = ssub.s32 %s1382_s16, %s1784_s28 }
  0x30   : > { %p1510_p10 = por %p1770_p8, %p46_p2  ;;  %p1167_p12 = scmp.lt.s32.totalorder %s1386_s17, 2 }
  0x31   : > { %p37_p13 = scmp.eq.s32.totalorder %s36_s30, 0  ;;  %s180_s27 = sand.u32 1, %s1374_s14  }
  0x32   : > { %s1141_s4 = smul.u32 96, %s180_s27  ;;  %p1522_p11 = pnand %p1167_p12, %p48_p6 }
  0x33   : > { %s1519_s5 = scalar_select %p37_p13, %s1374_s14, %s39_s25  }
  0x34   : > { %s1142_s26 = smul.u32 1536, %s1382_s16  ;;  %s184_s6 = scalar_lea.vmem [#allocation2], %s1141_s4 }
  0x35   : > { %s192_s7 = sshll.u32 %s184_s6, 4  ;;  %s1533_s11 = scalar_lea.sflag [#allocation3], %s180_s27  ;;  %s1531_s7 = int_to_ptr.vmem [resolvable:$true] %s192_s7 }
  0x36   : > { %s1529_s10 = scalar_lea.hbm %s1756_s0, %s1142_s26  ;;  %p1272_p3 = pneg %p1522_p11 }
  0x37   : > { %s1270_s18 = scalar_lea.hbm %s1529_s10, 1536  ;;  %s1275_s30 = scalar_lea.hbm %s1756_s0, 3072 }
  0x38   : > { %p1271_p0 = scmp.ne.s32.totalorder %s1529_s10, %s1270_s18  ;;  %p1276_p9 = scmp.lt.u32.totalorder %s1529_s10, %s1756_s0 }
  0x39   : > { %p1277_p1 = scmp.lt.u32.totalorder %s1275_s30, %s1270_s18  ;;  %p1279_p4 = scmp.lt.u32.totalorder %s1270_s18, %s1529_s10 }
  0x3a   : > { %p1273_p5 = pnand %p1272_p3, %p1271_p0 }
  0x3b   : > { %p1278_p2 = por %p1277_p1, %p1276_p9 }
  0x3c   : > { %p1274_p7 = pneg %p1273_p5 }
  0x3d   : > { %p1280_p6 = por %p1279_p4, %p1278_p2 }
  0x3f   : > { %p1281_p8 = pnand %p1280_p6, %p1274_p7 }
  0x41   : > { %1284 = shalt.err (!%p1281_p8)
}
  0x42   : > { %s1285_s27 = scalar_lea.vmem %s1531_s7, 1536  ;;  %s1391_s6 = smov [#allocation2]  }
  0x43   : > { %p1286_p12 = scmp.ne.s32.totalorder %s1531_s7, %s1285_s27  ;;  %s1290_s9 = sshll.u32 %s1391_s6, 4  ;;  %s1291_s9 = int_to_ptr.vmem [resolvable:$false] %s1290_s9 }
  0x44   : > { %s1292_s21 = scalar_lea.vmem %s1291_s9, 3072  ;;  %p1293_p5 = scmp.lt.s32.totalorder %s1531_s7, %s1291_s9 }
  0x45   : > { %p1288_p13 = pnand %p1286_p12, %p1272_p3  ;;  %p1294_p9 = scmp.lt.s32.totalorder %s1292_s21, %s1285_s27 }
  0x47   : > { %p1289_p0 = pneg %p1288_p13  ;;  %p1295_p1 = por %p1294_p9, %p1293_p5 }
  0x49   : > { %p1296_p2 = pnand %p1295_p1, %p1289_p0 }
  0x4b   : > { %1299 = shalt.err (!%p1296_p2)
}
  0x4c   : > { %s1392_s18 = smov 192   ;;  %s1393_s19 = smov 12  }
  0x4d   : > { %1161 = dma.hbm_to_vmem [thread:$0]  (!%p1522_p11), %s1529_s10, 1536, %s1531_s7, %s1533_s11, %s1392_s18, %s1392_s18, %s1393_s19  }
  0x4e   : > { %p1773_p3 = scmp.ne.s32.totalorder %s1768_s24, 0 }
  0x4f   : > { %s1564_s25 = sand.u32 (!%p1773_p3), 1, %s1370_s13   ;;  %p1774_p7 = scmp.ne.s32.totalorder (!%p1773_p3), %s1766_s22, 0 }
  0x50   : > { %204 = sbr.rel (%p1773_p3) target bundleno = 424 (0x1a8), region = 32  ;;  %s207_s4 = scalar_lea.sflag (!%p1773_p3), [#allocation3], %s1564_s25 }
  0x51   : > { %s1143_s30 = smul.u32 (!%p1773_p3), 96, %s1564_s25 }
  0x53   : > { %s1568_s26 = scalar_lea.vmem (!%p1773_p3), [#allocation2], %s1143_s30 }
  0x57   : > { %1353 = dma.done.wait (%p1774_p7), %s207_s4, 1536  }
  0x58   : > { %1355 = vsyncadd (%p1774_p7), %s207_s4, 4294965760  ;;  %p1775_p11 = scmp.ne.s32.totalorder %s1764_s20, 0 }
  0x5a   : > { %1357 = dma.done.wait (%p1775_p11), [#allocation6], 18432  }
  0x5b   : > { %1359 = vsyncadd (%p1775_p11), [#allocation6], 4294948864  ;;  %v1394_v0 = vmov 0   ;;  %v268_v1 = vld [vmem:[#allocation5 + $0x8] sm:$0xff]  ;;  %v271_v2 = vld [vmem:[#allocation5 + $0x20] sm:$0xff]  ;;  %s1144_s24 = smul.u32 192, %s1564_s25 }
  0x5c   : > { %669 = vmatprep.mubr.bf16.mxu1 %v1394_v0  ;;  %v364_v3 = vld [vmem:[#allocation5 + $0x308] sm:$0xff]  ;;  %v412_v4 = vpack.c.bf16 %v271_v2, %v268_v1  ;;  %v367_v5 = vld [vmem:[#allocation5 + $0x320] sm:$0xff]  ;;  %v270_v7 = vld [vmem:[#allocation5 + $0x18] sm:$0xff]  ;;  %s1145_s8 = smul.u32 3072, %s1378_s15  ;;  %s865_s6 = scalar_lea.sflag [#allocation4], %s1564_s25 }
  0x5d   : > { %v267_v6 = vld [vmem:[#allocation5] sm:$0xff]  ;;  %v460_v8 = vpack.c.bf16 %v367_v5, %v364_v3  ;;  %v366_v11 = vld [vmem:[#allocation5 + $0x318] sm:$0xff]  ;;  %v277_v14 = vld [vmem:[#allocation5 + $0x50] sm:$0xff]  ;;  %s1648_s7 = scalar_lea.vmem [#allocation7], %s1144_s24  ;;  %s1395_s21 = smov [#allocation7]  }
  0x5e   : > { %v411_v9 = vpack.c.bf16 %v270_v7, %v267_v6  ;;  %v363_v10 = vld [vmem:[#allocation5 + $0x300] sm:$0xff]  ;;  %v274_v12 = vld [vmem:[#allocation5 + $0x38] sm:$0xff]  ;;  %564 = vmatprep.subr.bf16.mxu0 %v412_v4  ;;  %v373_v16 = vld [vmem:[#allocation5 + $0x350] sm:$0xff]  ;;  %s881_s10 = sshll.u32 %s1648_s7, 4  ;;  %s1700_s27 = scalar_lea.hbm %s1759_s3, %s1145_s8  ;;  %s1702_s10 = int_to_ptr.vmem [resolvable:$true] %s881_s10 }
  0x5f   : > { %v459_v13 = vpack.c.bf16 %v366_v11, %v363_v10  ;;  %v370_v15 = vld [vmem:[#allocation5 + $0x338] sm:$0xff]  ;;  %637 = vmatprep.subr.bf16.mxu1 %v460_v8  ;;  %v415_v17 = vpack.c.bf16 %v277_v14, %v274_v12  ;;  %v273_v19 = vld [vmem:[#allocation5 + $0x30] sm:$0xff]  ;;  %v276_v20 = vld [vmem:[#allocation5 + $0x48] sm:$0xff]  ;;  %s1300_s9 = scalar_lea.vmem %s1702_s10, 3072  ;;  %s1304_s18 = sshll.u32 %s1395_s21, 4  ;;  %s1305_s18 = int_to_ptr.vmem [resolvable:$false] %s1304_s18 }
  0x60   : > { %565 = vmatpush1.bf16.msra.mxu0 %v411_v9  ;;  %v463_v18 = vpack.c.bf16 %v373_v16, %v370_v15  ;;  %v369_v21 = vld [vmem:[#allocation5 + $0x330] sm:$0xff]  ;;  %v414_v22 = vpack.c.bf16 %v276_v20, %v273_v19  ;;  %v372_v23 = vld [vmem:[#allocation5 + $0x348] sm:$0xff]  ;;  %v283_v25 = vld [vmem:[#allocation5 + $0x80] sm:$0xff]  ;;  %p1301_p4 = scmp.ne.s32.totalorder %s1702_s10, %s1300_s9  ;;  %s1306_s19 = scalar_lea.vmem %s1305_s18, 6144 }
  0x61   : > { %638 = vmatpush1.bf16.msra.mxu1 %v459_v13  ;;  %v280_v24 = vld [vmem:[#allocation5 + $0x68] sm:$0xff]  ;;  %566 = vmatprep.subr.bf16.mxu0 %v415_v17  ;;  %v462_v26 = vpack.c.bf16 %v372_v23, %v369_v21  ;;  %v379_v29 = vld [vmem:[#allocation5 + $0x380] sm:$0xff]  ;;  %v282_v32 = vld [vmem:[#allocation5 + $0x78] sm:$0xff]  ;;  %p1307_p12 = scmp.lt.s32.totalorder %s1702_s10, %s1305_s18  ;;  %p1308_p13 = scmp.lt.s32.totalorder %s1306_s19, %s1300_s9 }
  0x62   : > { %639 = vmatprep.subr.bf16.mxu1 %v463_v18  ;;  %v418_v27 = vpack.c.bf16 %v283_v25, %v280_v24  ;;  %v376_v28 = vld [vmem:[#allocation5 + $0x368] sm:$0xff]  ;;  %v279_v30 = vld [vmem:[#allocation5 + $0x60] sm:$0xff]  ;;  %v378_v34 = vld [vmem:[#allocation5 + $0x378] sm:$0xff]  ;;  %p1302_p6 = pnand %p1301_p4, %p1510_p10 }
  0x63   : > { %v466_v31 = vpack.c.bf16 %v379_v29, %v376_v28  ;;  %v375_v33 = vld [vmem:[#allocation5 + $0x360] sm:$0xff]  ;;  %v417_v35 = vpack.c.bf16 %v282_v32, %v279_v30  ;;  %v286_v36 = vld [vmem:[#allocation5 + $0x98] sm:$0xff]  ;;  %v289_v37 = vld [vmem:[#allocation5 + $0xb0] sm:$0xff]  ;;  %p1309_p0 = por %p1308_p13, %p1307_p12 }
  0x64   : > { %567 = vmatpush1.bf16.msra.mxu0 %v414_v22  ;;  %v382_v38 = vld [vmem:[#allocation5 + $0x398] sm:$0xff]  ;;  %v465_v39 = vpack.c.bf16 %v378_v34, %v375_v33  ;;  %v421_v40 = vpack.c.bf16 %v289_v37, %v286_v36  ;;  %v385_v41 = vld [vmem:[#allocation5 + $0x3b0] sm:$0xff]  ;;  %v288_v43 = vld [vmem:[#allocation5 + $0xa8] sm:$0xff]  ;;  %p1303_p8 = pneg %p1302_p6 }
  0x65   : > { %640 = vmatpush1.bf16.msra.mxu1 %v462_v26  ;;  %568 = vmatprep.subr.bf16.mxu0 %v418_v27  ;;  %v285_v42 = vld [vmem:[#allocation5 + $0x90] sm:$0xff]  ;;  %v469_v44 = vpack.c.bf16 %v385_v41, %v382_v38  ;;  %v384_v46 = vld [vmem:[#allocation5 + $0x3a8] sm:$0xff]  ;;  %v295_v48 = vld [vmem:[#allocation5 + $0xe0] sm:$0xff] }
  0x66   : > { %641 = vmatprep.subr.bf16.mxu1 %v466_v31  ;;  %v381_v45 = vld [vmem:[#allocation5 + $0x390] sm:$0xff]  ;;  %v292_v47 = vld [vmem:[#allocation5 + $0xc8] sm:$0xff]  ;;  %v391_v50 = vld [vmem:[#allocation5 + $0x3e0] sm:$0xff]  ;;  %v420_v51 = vpack.c.bf16 %v288_v43, %v285_v42  ;;  %p1310_p5 = pnand %p1309_p0, %p1303_p8 }
  0x67   : > { %v388_v49 = vld [vmem:[#allocation5 + $0x3c8] sm:$0xff]  ;;  %v468_v52 = vpack.c.bf16 %v384_v46, %v381_v45  ;;  %v424_v53 = vpack.c.bf16 %v295_v48, %v292_v47  ;;  %v291_v54 = vld [vmem:[#allocation5 + $0xc0] sm:$0xff]  ;;  %v294_v55 = vld [vmem:[#allocation5 + $0xd8] sm:$0xff] }
  0x68   : > { %569 = vmatpush1.bf16.msra.mxu0 %v417_v35  ;;  %v387_v56 = vld [vmem:[#allocation5 + $0x3c0] sm:$0xff]  ;;  %v472_v57 = vpack.c.bf16 %v391_v50, %v388_v49  ;;  %v390_v58 = vld [vmem:[#allocation5 + $0x3d8] sm:$0xff]  ;;  %v301_v60 = vld [vmem:[#allocation5 + $0x110] sm:$0xff]  ;;  %v423_v63 = vpack.c.bf16 %v294_v55, %v291_v54 }
  0x69   : > { %642 = vmatpush1.bf16.msra.mxu1 %v465_v39  ;;  %570 = vmatprep.subr.bf16.mxu0 %v421_v40  ;;  %v298_v59 = vld [vmem:[#allocation5 + $0xf8] sm:$0xff]  ;;  %v397_v62 = vld [vmem:[#allocation5 + $0x410] sm:$0xff]  ;;  %v471_v1 = vpack.c.bf16 %v390_v58, %v387_v56  ;;  %v300_v4 = vld [vmem:[#allocation5 + $0x108] sm:$0xff] }
  0x6a   : > { %643 = vmatprep.subr.bf16.mxu1 %v469_v44  ;;  %v394_v61 = vld [vmem:[#allocation5 + $0x3f8] sm:$0xff]  ;;  %v427_v2 = vpack.c.bf16 %v301_v60, %v298_v59  ;;  %v297_v3 = vld [vmem:[#allocation5 + $0xf0] sm:$0xff]  ;;  %v396_v7 = vld [vmem:[#allocation5 + $0x408] sm:$0xff] }
  0x6b   : > { %v393_v5 = vld [vmem:[#allocation5 + $0x3f0] sm:$0xff]  ;;  %v475_v6 = vpack.c.bf16 %v397_v62, %v394_v61  ;;  %v304_v8 = vld [vmem:[#allocation5 + $0x128] sm:$0xff]  ;;  %v307_v9 = vld [vmem:[#allocation5 + $0x140] sm:$0xff]  ;;  %v426_v12 = vpack.c.bf16 %v300_v4, %v297_v3 }
  0x6c   : > { %571 = vmatpush1.bf16.msra.mxu0 %v420_v51  ;;  %v400_v10 = vld [vmem:[#allocation5 + $0x428] sm:$0xff]  ;;  %v403_v11 = vld [vmem:[#allocation5 + $0x440] sm:$0xff]  ;;  %v306_v14 = vld [vmem:[#allocation5 + $0x138] sm:$0xff]  ;;  %v474_v15 = vpack.c.bf16 %v396_v7, %v393_v5  ;;  %v430_v16 = vpack.c.bf16 %v307_v9, %v304_v8 }
  0x6d   : > { %644 = vmatpush1.bf16.msra.mxu1 %v468_v52  ;;  %572 = vmatprep.subr.bf16.mxu0 %v424_v53  ;;  %v303_v13 = vld [vmem:[#allocation5 + $0x120] sm:$0xff]  ;;  %v402_v18 = vld [vmem:[#allocation5 + $0x438] sm:$0xff]  ;;  %v478_v20 = vpack.c.bf16 %v403_v11, %v400_v10  ;;  %v313_v21 = vld [vmem:[#allocation5 + $0x170] sm:$0xff] }
  0x6e   : > { %645 = vmatprep.subr.bf16.mxu1 %v472_v57  ;;  %v399_v17 = vld [vmem:[#allocation5 + $0x420] sm:$0xff]  ;;  %v310_v19 = vld [vmem:[#allocation5 + $0x158] sm:$0xff]  ;;  %v409_v23 = vld [vmem:[#allocation5 + $0x470] sm:$0xff]  ;;  %v429_v24 = vpack.c.bf16 %v306_v14, %v303_v13 }
  0x6f   : > { %v406_v22 = vld [vmem:[#allocation5 + $0x458] sm:$0xff]  ;;  %v477_v25 = vpack.c.bf16 %v402_v18, %v399_v17  ;;  %v433_v26 = vpack.c.bf16 %v313_v21, %v310_v19  ;;  %v309_v27 = vld [vmem:[#allocation5 + $0x150] sm:$0xff]  ;;  %v312_v28 = vld [vmem:[#allocation5 + $0x168] sm:$0xff] }
  0x70   : > { %573 = vmatpush1.bf16.msra.mxu0 %v423_v63  ;;  %v405_v29 = vld [vmem:[#allocation5 + $0x450] sm:$0xff]  ;;  %v481_v30 = vpack.c.bf16 %v409_v23, %v406_v22  ;;  %v408_v31 = vld [vmem:[#allocation5 + $0x468] sm:$0xff]  ;;  %v319_v33 = vld [vmem:[#allocation5 + $0x1a0] sm:$0xff]  ;;  %v432_v36 = vpack.c.bf16 %v312_v28, %v309_v27 }
  0x71   : > { %646 = vmatpush1.bf16.msra.mxu1 %v471_v1  ;;  %574 = vmatprep.subr.bf16.mxu0 %v427_v2  ;;  %v316_v32 = vld [vmem:[#allocation5 + $0x188] sm:$0xff]  ;;  %v317_v34 = vld [vmem:[#allocation5 + $0x190] sm:$0xff]  ;;  %v480_v37 = vpack.c.bf16 %v408_v31, %v405_v29  ;;  %v315_v39 = vld [vmem:[#allocation5 + $0x180] sm:$0xff] }
  0x72   : > { %647 = vmatprep.subr.bf16.mxu1 %v475_v6  ;;  %v320_v35 = vld [vmem:[#allocation5 + $0x1a8] sm:$0xff]  ;;  %v436_v38 = vpack.c.bf16 %v319_v33, %v316_v32  ;;  %v318_v40 = vld [vmem:[#allocation5 + $0x198] sm:$0xff]  ;;  %v269_v41 = vld [vmem:[#allocation5 + $0x10] sm:$0xff] }
  0x73   : > { %v437_v42 = vpack.c.bf16 %v320_v35, %v317_v34  ;;  %v272_v43 = vld [vmem:[#allocation5 + $0x28] sm:$0xff]  ;;  %v322_v44 = vld [vmem:[#allocation5 + $0x1b8] sm:$0xff]  ;;  %v325_v45 = vld [vmem:[#allocation5 + $0x1d0] sm:$0xff]  ;;  %v435_v49 = vpack.c.bf16 %v318_v40, %v315_v39 }
  0x74   : > { %575 = vmatpush1.bf16.msra.mxu0 %v426_v12  ;;  %v323_v46 = vld [vmem:[#allocation5 + $0x1c0] sm:$0xff]  ;;  %v326_v47 = vld [vmem:[#allocation5 + $0x1d8] sm:$0xff]  ;;  %v1580_v48 = vld [vmem:[%s1568_s26 + $0x8] ss:$12 sps:$4 sm:$0xff]   ;;  %v413_v51 = vpack.c.bf16 %v272_v43, %v269_v41  ;;  %v439_v52 = vpack.c.bf16 %v325_v45, %v322_v44 }
  0x75   : > { %648 = vmatpush1.bf16.msra.mxu1 %v474_v15  ;;  %576 = vmatprep.subr.bf16.mxu0 %v430_v16  ;;  %v321_v50 = vld [vmem:[#allocation5 + $0x1b0] sm:$0xff]  ;;  %v324_v53 = vld [vmem:[#allocation5 + $0x1c8] sm:$0xff]  ;;  %v275_v54 = vld [vmem:[#allocation5 + $0x40] sm:$0xff]  ;;  %v440_v56 = vpack.c.bf16 %v326_v47, %v323_v46 }
  0x76   : > { %649 = vmatprep.subr.bf16.mxu1 %v478_v20  ;;  %v278_v55 = vld [vmem:[#allocation5 + $0x58] sm:$0xff]  ;;  %v328_v57 = vld [vmem:[#allocation5 + $0x1e8] sm:$0xff]  ;;  %v331_v58 = vld [vmem:[#allocation5 + $0x200] sm:$0xff]  ;;  %v438_v61 = vpack.c.bf16 %v324_v53, %v321_v50 }
  0x77   : > { %v329_v59 = vld [vmem:[#allocation5 + $0x1f0] sm:$0xff]  ;;  %v332_v60 = vld [vmem:[#allocation5 + $0x208] sm:$0xff]  ;;  %v416_v62 = vpack.c.bf16 %v278_v55, %v275_v54  ;;  %v442_v63 = vpack.c.bf16 %v331_v58, %v328_v57  ;;  %v327_v1 = vld [vmem:[#allocation5 + $0x1e0] sm:$0xff] }
  0x78   : > { %577 = vmatpush1.bf16.msra.mxu0 %v429_v24  ;;  %v330_v2 = vld [vmem:[#allocation5 + $0x1f8] sm:$0xff]  ;;  %v281_v3 = vld [vmem:[#allocation5 + $0x70] sm:$0xff]  ;;  %v443_v4 = vpack.c.bf16 %v332_v60, %v329_v59  ;;  %v284_v5 = vld [vmem:[#allocation5 + $0x88] sm:$0xff] }
  0x79   : > { %650 = vmatpush1.bf16.msra.mxu1 %v477_v25  ;;  %578 = vmatprep.subr.bf16.mxu0 %v433_v26  ;;  %v334_v6 = vld [vmem:[#allocation5 + $0x218] sm:$0xff]  ;;  %v337_v7 = vld [vmem:[#allocation5 + $0x230] sm:$0xff]  ;;  %v335_v8 = vld [vmem:[#allocation5 + $0x220] sm:$0xff]  ;;  %v441_v11 = vpack.c.bf16 %v330_v2, %v327_v1  ;;  %v419_v14 = vpack.c.bf16 %v284_v5, %v281_v3 }
  0x7a   : > { %651 = vmatprep.subr.bf16.mxu1 %v481_v30  ;;  %v338_v9 = vld [vmem:[#allocation5 + $0x238] sm:$0xff]  ;;  %v1585_v10 = vld [vmem:[%s1568_s26 + $0x20] ss:$12 sps:$4 sm:$0xff]   ;;  %v333_v12 = vld [vmem:[#allocation5 + $0x210] sm:$0xff]  ;;  %v445_v15 = vpack.c.bf16 %v337_v7, %v334_v6 }
  0x7b   : > { %v336_v13 = vld [vmem:[#allocation5 + $0x228] sm:$0xff]  ;;  %v287_v16 = vld [vmem:[#allocation5 + $0xa0] sm:$0xff]  ;;  %v446_v17 = vpack.c.bf16 %v338_v9, %v335_v8  ;;  %v290_v18 = vld [vmem:[#allocation5 + $0xb8] sm:$0xff] }
  0x7c   : > { %579 = vmatpush1.bf16.msra.mxu0 %v432_v36  ;;  %v340_v19 = vld [vmem:[#allocation5 + $0x248] sm:$0xff]  ;;  %v343_v20 = vld [vmem:[#allocation5 + $0x260] sm:$0xff]  ;;  %v341_v21 = vld [vmem:[#allocation5 + $0x250] sm:$0xff]  ;;  %v444_v23 = vpack.c.bf16 %v336_v13, %v333_v12  ;;  %v422_v26 = vpack.c.bf16 %v290_v18, %v287_v16 }
  0x7d   : > { %652 = vmatpush1.bf16.msra.mxu1 %v480_v37  ;;  %580 = vmatprep.subr.bf16.mxu0 %v436_v38  ;;  %v344_v22 = vld [vmem:[#allocation5 + $0x268] sm:$0xff]  ;;  %v339_v24 = vld [vmem:[#allocation5 + $0x240] sm:$0xff]  ;;  %v342_v25 = vld [vmem:[#allocation5 + $0x258] sm:$0xff]  ;;  %v448_v27 = vpack.c.bf16 %v343_v20, %v340_v19 }
  0x7e   : > { %1017 = vmatprep.subr.bf16.mxu1 %v437_v42  ;;  %v293_v28 = vld [vmem:[#allocation5 + $0xd0] sm:$0xff]  ;;  %v296_v29 = vld [vmem:[#allocation5 + $0xe8] sm:$0xff]  ;;  %v346_v30 = vld [vmem:[#allocation5 + $0x278] sm:$0xff]  ;;  %v449_v31 = vpack.c.bf16 %v344_v22, %v341_v21  ;;  %v447_v37 = vpack.c.bf16 %v342_v25, %v339_v24 }
  0x7f   : > { %v349_v32 = vld [vmem:[#allocation5 + $0x290] sm:$0xff]  ;;  %v347_v33 = vld [vmem:[#allocation5 + $0x280] sm:$0xff]  ;;  %v350_v34 = vld [vmem:[#allocation5 + $0x298] sm:$0xff]  ;;  %v425_v40 = vpack.c.bf16 %v296_v29, %v293_v28 }
  0x80   : > { %670 = vmatmul.mubr.bf16.vlgmr.msra.gmra.mrb[0].mxu1 %v1580_v48  ;;  %581 = vmatpush1.bf16.msra.mxu0 %v435_v49  ;;  %v1232_v35 = vld [vmem:[%s1568_s26 + $0x4] ss:$12 sps:$4 sm:$0xff]   ;;  %v348_v39 = vld [vmem:[#allocation5 + $0x288] sm:$0xff]  ;;  %v451_v41 = vpack.c.bf16 %v349_v32, %v346_v30  ;;  %v452_v43 = vpack.c.bf16 %v350_v34, %v347_v33  ;;  %v302_v44 = vld [vmem:[#allocation5 + $0x118] sm:$0xff] }
  0x81   : > { %1018 = vmatpush3.bf16.msra.mxu1 %v413_v51  ;;  %582 = vmatprep.subr.bf16.mxu0 %v439_v52  ;;  %v1591_v36 = vld [vmem:[%s1568_s26 + $0x38] ss:$12 sps:$4 sm:$0xff]   ;;  %v345_v38 = vld [vmem:[#allocation5 + $0x270] sm:$0xff]  ;;  %v352_v45 = vld [vmem:[#allocation5 + $0x2a8] sm:$0xff] }
  0x82   : > { %1019 = vmatprep.subr.bf16.mxu1 %v440_v56  ;;  %679 = vmatprep.mubr.bf16.mxu1 %v1394_v0  ;;  %v299_v42 = vld [vmem:[#allocation5 + $0x100] sm:$0xff]  ;;  %v353_v47 = vld [vmem:[#allocation5 + $0x2b0] sm:$0xff]  ;;  %v356_v49 = vld [vmem:[#allocation5 + $0x2c8] sm:$0xff]  ;;  %v450_v50 = vpack.c.bf16 %v348_v39, %v345_v38 }
  0x83   : > { %v355_v46 = vld [vmem:[#allocation5 + $0x2c0] sm:$0xff]  ;;  %596 = vmatprep.mubr.bf16.mxu0 %v1232_v35  ;;  %v428_v52 = vpack.c.bf16 %v302_v44, %v299_v42  ;;  %v354_v54 = vld [vmem:[#allocation5 + $0x2b8] sm:$0xff]  ;;  %v305_v55 = vld [vmem:[#allocation5 + $0x130] sm:$0xff]  ;;  %v455_v57 = vpack.c.bf16 %v356_v49, %v353_v47 }
  0x84   : > { %583 = vmatpush1.bf16.msra.mxu0 %v438_v61  ;;  %v351_v51 = vld [vmem:[#allocation5 + $0x2a0] sm:$0xff]  ;;  %v454_v53 = vpack.c.bf16 %v355_v46, %v352_v45  ;;  %v308_v56 = vld [vmem:[#allocation5 + $0x148] sm:$0xff]  ;;  %v358_v58 = vld [vmem:[#allocation5 + $0x2d8] sm:$0xff] }
  0x85   : > { %1020 = vmatpush3.bf16.msra.mxu1 %v416_v62  ;;  %584 = vmatprep.subr.bf16.mxu0 %v442_v63  ;;  %v361_v59 = vld [vmem:[#allocation5 + $0x2f0] sm:$0xff]  ;;  %v359_v60 = vld [vmem:[#allocation5 + $0x2e0] sm:$0xff]  ;;  %v362_v61 = vld [vmem:[#allocation5 + $0x2f8] sm:$0xff]  ;;  %v453_v63 = vpack.c.bf16 %v354_v54, %v351_v51  ;;  %v431_v1 = vpack.c.bf16 %v308_v56, %v305_v55 }
  0x86   : > { %1021 = vmatprep.subr.bf16.mxu1 %v443_v4  ;;  %v1596_v62 = vld [vmem:[%s1568_s26 + $0x50] ss:$12 sps:$4 sm:$0xff]   ;;  %v457_v2 = vpack.c.bf16 %v361_v59, %v358_v58  ;;  %v360_v4 = vld [vmem:[#allocation5 + $0x2e8] sm:$0xff]  ;;  %v311_v5 = vld [vmem:[#allocation5 + $0x160] sm:$0xff]  ;;  %v458_v6 = vpack.c.bf16 %v362_v61, %v359_v60 }
  0x87   : > { %v357_v3 = vld [vmem:[#allocation5 + $0x2d0] sm:$0xff]  ;;  %v368_v8 = vld [vmem:[#allocation5 + $0x328] sm:$0xff]  ;;  %v371_v13 = vld [vmem:[#allocation5 + $0x340] sm:$0xff] }
  0x88   : > { %680 = vmatmul.mubr.bf16.gmra.mrb[4].mxu1 %v1585_v10  ;;  %585 = vmatpush1.bf16.msra.mxu0 %v441_v11  ;;  %v365_v7 = vld [vmem:[#allocation5 + $0x310] sm:$0xff]  ;;  %v456_v9 = vpack.c.bf16 %v360_v4, %v357_v3  ;;  %v380_v19 = vld [vmem:[#allocation5 + $0x388] sm:$0xff]  ;;  %v383_v21 = vld [vmem:[#allocation5 + $0x3a0] sm:$0xff] }
  0x89   : > { %1022 = vmatpush3.bf16.msra.mxu1 %v419_v14  ;;  %586 = vmatprep.subr.bf16.mxu0 %v445_v15  ;;  %v461_v12 = vpack.c.bf16 %v368_v8, %v365_v7  ;;  %v374_v14 = vld [vmem:[#allocation5 + $0x358] sm:$0xff]  ;;  %v1230_v15 = vld [vmem:[%s1568_s26] ss:$12 sps:$4 sm:$0xff]   ;;  %v377_v18 = vld [vmem:[#allocation5 + $0x370] sm:$0xff] }
  0x8a   : > { %1023 = vmatprep.subr.bf16.mxu1 %v446_v17  ;;  %689 = vmatprep.mubr.bf16.mxu1 %v1394_v0  ;;  %v464_v16 = vpack.c.bf16 %v374_v14, %v371_v13  ;;  %v1233_v17 = vld [vmem:[%s1568_s26 + $0x1c] ss:$12 sps:$4 sm:$0xff]   ;;  %v467_v20 = vpack.c.bf16 %v380_v19, %v377_v18  ;;  %v1236_v25 = vld [vmem:[%s1568_s26 + $0x34] ss:$12 sps:$4 sm:$0xff]   ;;  %v1239_v33 = vld [vmem:[%s1568_s26 + $0x4c] ss:$12 sps:$4 sm:$0xff]  }
  0x8b   : > { %v386_v22 = vld [vmem:[#allocation5 + $0x3b8] sm:$0xff]  ;;  %v395_v29 = vld [vmem:[#allocation5 + $0x400] sm:$0xff]  ;;  %v401_v34 = vld [vmem:[#allocation5 + $0x430] sm:$0xff] }
  0x8c   : > { %587 = vmatpush1.bf16.msra.mxu0 %v444_v23  ;;  %v1235_v23 = vld [vmem:[%s1568_s26 + $0x18] ss:$12 sps:$4 sm:$0xff]   ;;  %v470_v24 = vpack.c.bf16 %v386_v22, %v383_v21 }
  0x8d   : > { %1024 = vmatpush3.bf16.msra.mxu1 %v422_v26  ;;  %588 = vmatprep.subr.bf16.mxu0 %v448_v27  ;;  %v389_v26 = vld [vmem:[#allocation5 + $0x3d0] sm:$0xff]  ;;  %v392_v27 = vld [vmem:[#allocation5 + $0x3e8] sm:$0xff]  ;;  %v398_v30 = vld [vmem:[#allocation5 + $0x418] sm:$0xff] }
  0x8e   : > { %1025 = vmatprep.subr.bf16.mxu1 %v449_v31  ;;  %v473_v28 = vpack.c.bf16 %v392_v27, %v389_v26  ;;  %v1238_v31 = vld [vmem:[%s1568_s26 + $0x30] ss:$12 sps:$4 sm:$0xff]   ;;  %v476_v32 = vpack.c.bf16 %v398_v30, %v395_v29  ;;  %v407_v38 = vld [vmem:[#allocation5 + $0x460] sm:$0xff] }
  0x8f   : > { %v410_v39 = vld [vmem:[#allocation5 + $0x478] sm:$0xff] }
  0x90   : > { %690 = vmatmul.mubr.bf16.gmra.mrb[8].mxu1 %v1591_v36  ;;  %589 = vmatpush1.bf16.msra.mxu0 %v447_v37 }
  0x91   : > { %1026 = vmatpush3.bf16.msra.mxu1 %v425_v40  ;;  %590 = vmatprep.subr.bf16.mxu0 %v451_v41  ;;  %v1241_v40 = vld [vmem:[%s1568_s26 + $0x48] ss:$12 sps:$4 sm:$0xff]   ;;  %v482_v41 = vpack.c.bf16 %v410_v39, %v407_v38 }
  0x92   : > { %1027 = vmatprep.subr.bf16.mxu1 %v452_v43  ;;  %699 = vmatprep.mubr.bf16.mxu1 %v1394_v0  ;;  %v314_v0 = vld [vmem:[#allocation5 + $0x178] sm:$0xff] }
  0x93   : > { %v434_v11 = vpack.c.bf16 %v314_v0, %v311_v5 }
  0x94   : > { %591 = vmatpush1.bf16.msra.mxu0 %v450_v50 }
  0x95   : > { %1028 = vmatpush3.bf16.msra.mxu1 %v428_v52  ;;  %592 = vmatprep.subr.bf16.mxu0 %v454_v53 }
  0x96   : > { %1029 = vmatprep.subr.bf16.mxu1 %v455_v57  ;;  %v1628_v57 = vld [vmem:[%s1758_s2] sm:$0x7] }
  0x98   : > { %700 = vmatmul.mubr.bf16.gmra.mrb[12].mxu1 %v1596_v62  ;;  %593 = vmatpush1.bf16.msra.mxu0 %v453_v63 }
  0x99   : > { %1030 = vmatpush3.bf16.msra.mxu1 %v431_v1  ;;  %594 = vmatprep.subr.bf16.mxu0 %v457_v2 }
  0x9a   : > { %1031 = vmatprep.subr.bf16.mxu1 %v458_v6  ;;  %742 = vmatprep.mubr.bf16.mxu1 %v1232_v35  ;;  %v404_v35 = vld [vmem:[#allocation5 + $0x448] sm:$0xff] }
  0x9b   : > { %v479_v37 = vpack.c.bf16 %v404_v35, %v401_v34 }
  0x9c   : > { %595 = vmatpush1.bf16.msra.mxu0 %v456_v9 }
  0x9d   : > { %1032 = vmatpush3.bf16.msra.mxu1 %v434_v11  ;;  %1069 = vmatprep.subr.bf16.mxu0 %v461_v12 }
  0x9e   : > { %1093 = vmatprep.subr.bf16.mxu1 %v461_v12 }
  0x9f   : > { %597 = vmatmul.mubr.bf16.vlgmr.msra.gmra.mrb[0].mxu0 %v1230_v15 }
  0xa0   : > { %743 = vmatmul.mubr.bf16.vlgmr.msra.gmra.mrb[16].mxu1 %v1230_v15  ;;  %1070 = vmatpush3.bf16.msra.mxu0 %v461_v12 }
  0xa1   : > { %1101 = vmatpush3.bf16.msra.mxu1 %v461_v12  ;;  %1071 = vmatprep.subr.bf16.mxu0 %v464_v16 }
  0xa2   : > { %1094 = vmatprep.subr.bf16.mxu1 %v464_v16  ;;  %606 = vmatprep.mubr.bf16.mxu0 %v1233_v17 }
  0xa3   : > { %750 = vmatprep.mubr.bf16.mxu1 %v1233_v17 }
  0xa4   : > { %1072 = vmatpush3.bf16.msra.mxu0 %v464_v16 }
  0xa5   : > { %1102 = vmatpush3.bf16.msra.mxu1 %v464_v16  ;;  %1073 = vmatprep.subr.bf16.mxu0 %v467_v20 }
  0xa6   : > { %1095 = vmatprep.subr.bf16.mxu1 %v467_v20 }
  0xa7   : > { %607 = vmatmul.mubr.bf16.gmra.mrb[4].mxu0 %v1235_v23 }
  0xa8   : > { %751 = vmatmul.mubr.bf16.gmra.mrb[20].mxu1 %v1235_v23  ;;  %1074 = vmatpush3.bf16.msra.mxu0 %v467_v20 }
  0xa9   : > { %1103 = vmatpush3.bf16.msra.mxu1 %v467_v20  ;;  %1075 = vmatprep.subr.bf16.mxu0 %v470_v24 }
  0xaa   : > { %1096 = vmatprep.subr.bf16.mxu1 %v470_v24  ;;  %616 = vmatprep.mubr.bf16.mxu0 %v1236_v25 }
  0xab   : > { %758 = vmatprep.mubr.bf16.mxu1 %v1236_v25 }
  0xac   : > { %1076 = vmatpush3.bf16.msra.mxu0 %v470_v24 }
  0xad   : > { %1104 = vmatpush3.bf16.msra.mxu1 %v470_v24  ;;  %1077 = vmatprep.subr.bf16.mxu0 %v473_v28 }
  0xae   : > { %1097 = vmatprep.subr.bf16.mxu1 %v473_v28 }
  0xaf   : > { %617 = vmatmul.mubr.bf16.gmra.mrb[8].mxu0 %v1238_v31 }
  0xb0   : > { %759 = vmatmul.mubr.bf16.gmra.mrb[24].mxu1 %v1238_v31  ;;  %1078 = vmatpush3.bf16.msra.mxu0 %v473_v28 }
  0xb1   : > { %1105 = vmatpush3.bf16.msra.mxu1 %v473_v28  ;;  %1079 = vmatprep.subr.bf16.mxu0 %v476_v32 }
  0xb2   : > { %1098 = vmatprep.subr.bf16.mxu1 %v476_v32  ;;  %626 = vmatprep.mubr.bf16.mxu0 %v1239_v33 }
  0xb3   : > { %766 = vmatprep.mubr.bf16.mxu1 %v1239_v33 }
  0xb4   : > { %1080 = vmatpush3.bf16.msra.mxu0 %v476_v32 }
  0xb5   : > { %1106 = vmatpush3.bf16.msra.mxu1 %v476_v32  ;;  %1081 = vmatprep.subr.bf16.mxu0 %v479_v37 }
  0xb6   : > { %1099 = vmatprep.subr.bf16.mxu1 %v479_v37 }
  0xb7   : > { %627 = vmatmul.mubr.bf16.gmra.mrb[12].mxu0 %v1241_v40 }
  0xb8   : > { %767 = vmatmul.mubr.bf16.gmra.mrb[28].mxu1 %v1241_v40  ;;  %1082 = vmatpush3.bf16.msra.mxu0 %v479_v37 }
  0xb9   : > { %1107 = vmatpush3.bf16.msra.mxu1 %v479_v37  ;;  %1083 = vmatprep.subr.bf16.mxu0 %v482_v41 }
  0xba   : > { %1100 = vmatprep.subr.bf16.mxu1 %v482_v41  ;;  %1085 = vmatprep.mubr.bf16.mxu0 %v1580_v48  ;;  %v485_v48 = vlaneseq }
  0xbb   : > { %1089 = vmatprep.mubr.bf16.mxu1 %v1591_v36 }
  0xbc   : > { %1084 = vmatpush3.bf16.msra.mxu0 %v482_v41 }
  0xbd   : > { %1108 = vmatpush3.bf16.msra.mxu1 %v482_v41 }
  0xbf   : > { %1086 = vmatmul.mubr.bf16.vlgmr.msra.gmra.mrb[16].mxu0 %v1585_v10  ;;  %v1618_v10 = vshrl.u32 %v485_v48, 7 }
  0xc0   : > { %1090 = vmatmul.mubr.bf16.vlgmr.msra.gmra.mrb[32].mxu1 %v1596_v62 }
  0xc1   : > { %v487_v55 = vsub.s32 0, %v1618_v10  ;;  %v491_v58 = vsub.s32 1, %v1618_v10 }
  0xc3   : > { %v1636_v61 = vrot.slane %v1628_v57, %v487_v55  ;;  %v1640_v62 = vrot.slane %v1628_v57, %v491_v58 }
 0x153   : > { %v671_v42 = vpop.f32.mrb[0].mxu1 }
 0x154   : > { %v673_v43 = vpop.f32.mrb[1].mxu1 }
 0x155   : > { %v675_v44 = vpop.f32.mrb[2].mxu1 }
 0x156   : > { %v677_v45 = vpop.f32.mrb[3].mxu1 }
 0x15b   : > { %v681_v46 = vpop.f32.mrb[4].mxu1 }
 0x15c   : > { %v683_v47 = vpop.f32.mrb[5].mxu1 }
 0x15d   : > { %v685_v49 = vpop.f32.mrb[6].mxu1 }
 0x15e   : > { %v687_v50 = vpop.f32.mrb[7].mxu1 }
 0x163   : > { %v1610_v51 = vpop.f32.mrb[8].mxu1 }
 0x164   : > { %v1612_v52 = vpop.f32.mrb[9].mxu1 }
 0x165   : > { %v1614_v36 = vpop.f32.mrb[10].mxu1 }
 0x166   : > { %v1616_v53 = vpop.f32.mrb[11].mxu1 }
 0x16b   : > { %v1620_v54 = vpop.f32.mrb[12].mxu1 }
 0x16c   : > { %v1623_v56 = vpop.f32.mrb[13].mxu1 }
 0x16d   : > { %v1631_v59 = vpop.f32.mrb[14].mxu1 }
 0x16e   : > { %v1633_v60 = vpop.f32.mrb[15].mxu1 }
 0x172   : > { %v598_v63 = vpop.f32.mrb[0].mxu0 }
 0x173   : > { %v599_v1 = vadd.f32 %v598_v63, %v1636_v61  ;;  %v1033_v2 = vpop.f32.mrb[16].mxu1  ;;  %v600_v3 = vpop.f32.mrb[1].mxu0 }
 0x174   : > { %v601_v4 = vadd.f32 %v600_v3, %v1640_v62  ;;  %v1034_v5 = vpop.f32.mrb[17].mxu1  ;;  %v602_v6 = vpop.f32.mrb[2].mxu0 }
 0x175   : > { %v672_v0 = vadd.f32 %v671_v42, %v599_v1  ;;  %v1644_v7 = vadd.f32 %v1034_v5, %v1033_v2  ;;  %v603_v8 = vadd.f32 %v602_v6, %v1636_v61  ;;  %v1036_v9 = vpop.f32.mrb[18].mxu1  ;;  %v604_v11 = vpop.f32.mrb[3].mxu0  ;;  %v495_v2 = vsub.s32 2, %v1618_v10 }
 0x176   : > { %v674_v12 = vadd.f32 %v673_v43, %v601_v4  ;;  %v605_v13 = vadd.f32 %v604_v11, %v1640_v62  ;;  %v1037_v14 = vpop.f32.mrb[19].mxu1 }
 0x177   : > { %840 = vst [vmem:[%s1648_s7] sm:$0xff] %v672_v0  ;;  %v676_v15 = vadd.f32 %v675_v44, %v603_v8  ;;  %v1651_v16 = vadd.f32 %v1037_v14, %v1036_v9  ;;  %v496_v14 = vrot.slane %v1628_v57, %v495_v2 }
 0x178   : > { %841 = vst [vmem:[%s1648_s7 + $0x8] sm:$0xff] %v674_v12  ;;  %v678_v17 = vadd.f32 %v677_v45, %v605_v13 }
 0x179   : > { %843 = vst [vmem:[%s1648_s7 + $0x18] sm:$0xff] %v676_v15 }
 0x17a   : > { %844 = vst [vmem:[%s1648_s7 + $0x20] sm:$0xff] %v678_v17  ;;  %v608_v18 = vpop.f32.mrb[4].mxu0 }
 0x17b   : > { %v609_v19 = vadd.f32 %v608_v18, %v1636_v61  ;;  %v1039_v20 = vpop.f32.mrb[20].mxu1  ;;  %v610_v21 = vpop.f32.mrb[5].mxu0 }
 0x17c   : > { %v611_v22 = vadd.f32 %v610_v21, %v1640_v62  ;;  %v1040_v23 = vpop.f32.mrb[21].mxu1  ;;  %v612_v24 = vpop.f32.mrb[6].mxu0 }
 0x17d   : > { %v682_v25 = vadd.f32 %v681_v46, %v609_v19  ;;  %v1041_v26 = vadd.f32 %v1040_v23, %v1039_v20  ;;  %v613_v27 = vadd.f32 %v612_v24, %v1636_v61  ;;  %v1042_v28 = vpop.f32.mrb[22].mxu1  ;;  %v614_v29 = vpop.f32.mrb[7].mxu0 }
 0x17e   : > { %v684_v30 = vadd.f32 %v683_v47, %v611_v22  ;;  %v615_v31 = vadd.f32 %v614_v29, %v1640_v62  ;;  %v1043_v32 = vpop.f32.mrb[23].mxu1 }
 0x17f   : > { %846 = vst [vmem:[%s1648_s7 + $0x30] sm:$0xff] %v682_v25  ;;  %v686_v33 = vadd.f32 %v685_v49, %v613_v27  ;;  %v1044_v34 = vadd.f32 %v1043_v32, %v1042_v28 }
 0x180   : > { %847 = vst [vmem:[%s1648_s7 + $0x38] sm:$0xff] %v684_v30  ;;  %v688_v35 = vadd.f32 %v687_v50, %v615_v31 }
 0x181   : > { %849 = vst [vmem:[%s1648_s7 + $0x48] sm:$0xff] %v686_v33 }
 0x182   : > { %850 = vst [vmem:[%s1648_s7 + $0x50] sm:$0xff] %v688_v35  ;;  %v618_v37 = vpop.f32.mrb[8].mxu0 }
 0x183   : > { %v619_v38 = vadd.f32 %v618_v37, %v1636_v61  ;;  %v1045_v39 = vpop.f32.mrb[24].mxu1  ;;  %v620_v40 = vpop.f32.mrb[9].mxu0 }
 0x184   : > { %v621_v41 = vadd.f32 %v620_v40, %v1640_v62  ;;  %v1046_v42 = vpop.f32.mrb[25].mxu1  ;;  %v622_v43 = vpop.f32.mrb[10].mxu0 }
 0x185   : > { %v692_v44 = vadd.f32 %v1610_v51, %v619_v38  ;;  %v1047_v45 = vadd.f32 %v1046_v42, %v1045_v39  ;;  %v623_v46 = vadd.f32 %v622_v43, %v1636_v61  ;;  %v1048_v47 = vpop.f32.mrb[26].mxu1  ;;  %v624_v49 = vpop.f32.mrb[11].mxu0 }
 0x186   : > { %v694_v50 = vadd.f32 %v1612_v52, %v621_v41  ;;  %v625_v48 = vadd.f32 %v624_v49, %v1640_v62  ;;  %v1049_v55 = vpop.f32.mrb[27].mxu1 }
 0x187   : > { %852 = vst [vmem:[%s1648_s7 + $0x60] sm:$0xff] %v692_v44  ;;  %v696_v58 = vadd.f32 %v1614_v36, %v623_v46  ;;  %v1050_v63 = vadd.f32 %v1049_v55, %v1048_v47  ;;  %v761_v21 = vadd.f32 %v1047_v45, %v496_v14 }
 0x188   : > { %853 = vst [vmem:[%s1648_s7 + $0x68] sm:$0xff] %v694_v50  ;;  %v698_v1 = vadd.f32 %v1616_v53, %v625_v48 }
 0x189   : > { %855 = vst [vmem:[%s1648_s7 + $0x78] sm:$0xff] %v696_v58  ;;  %v764_v30 = vadd.f32 %v1050_v63, %v496_v14 }
 0x18a   : > { %856 = vst [vmem:[%s1648_s7 + $0x80] sm:$0xff] %v698_v1  ;;  %v628_v51 = vpop.f32.mrb[12].mxu0 }
 0x18b   : > { %v629_v3 = vadd.f32 %v628_v51, %v1636_v61  ;;  %v1051_v4 = vpop.f32.mrb[28].mxu1  ;;  %v630_v52 = vpop.f32.mrb[13].mxu0 }
 0x18c   : > { %v631_v5 = vadd.f32 %v630_v52, %v1640_v62  ;;  %v1052_v6 = vpop.f32.mrb[29].mxu1  ;;  %v632_v36 = vpop.f32.mrb[14].mxu0 }
 0x18d   : > { %v702_v0 = vadd.f32 %v1620_v54, %v629_v3  ;;  %v1053_v53 = vadd.f32 %v1052_v6, %v1051_v4  ;;  %v633_v8 = vadd.f32 %v632_v36, %v1636_v61  ;;  %v1054_v9 = vpop.f32.mrb[30].mxu1  ;;  %v634_v11 = vpop.f32.mrb[15].mxu0  ;;  %v753_v61 = vadd.f32 %v1041_v26, %v496_v14 }
 0x18e   : > { %v704_v10 = vadd.f32 %v1623_v56, %v631_v5  ;;  %v635_v12 = vadd.f32 %v634_v11, %v1640_v62  ;;  %v1055_v13 = vpop.f32.mrb[31].mxu1  ;;  %v745_v56 = vadd.f32 %v1644_v7, %v496_v14  ;;  %v748_v26 = vadd.f32 %v1651_v16, %v496_v14 }
 0x18f   : > { %858 = vst [vmem:[%s1648_s7 + $0x90] sm:$0xff] %v702_v0  ;;  %v706_v15 = vadd.f32 %v1631_v59, %v633_v8  ;;  %v1056_v17 = vadd.f32 %v1055_v13, %v1054_v9  ;;  %v769_v19 = vadd.f32 %v1053_v53, %v496_v14  ;;  %v756_v59 = vadd.f32 %v1044_v34, %v496_v14 }
 0x190   : > { %859 = vst [vmem:[%s1648_s7 + $0x98] sm:$0xff] %v704_v10  ;;  %v708_v54 = vadd.f32 %v1633_v60, %v635_v12 }
 0x191   : > { %861 = vst [vmem:[%s1648_s7 + $0xa8] sm:$0xff] %v706_v15  ;;  %v772_v25 = vadd.f32 %v1056_v17, %v496_v14 }
 0x192   : > { %862 = vst [vmem:[%s1648_s7 + $0xb0] sm:$0xff] %v708_v54  ;;  %v1087_v18 = vpop.f32.mrb[16].mxu0 }
 0x193   : > { %v818_v62 = vadd.f32 %v1087_v18, %v753_v61  ;;  %v1091_v20 = vpop.f32.mrb[32].mxu1  ;;  %v809_v57 = vpop.f32.mrb[17].mxu0 }
 0x194   : > { %v834_v22 = vadd.f32 %v1091_v20, %v769_v19  ;;  %v810_v23 = vadd.f32 %v809_v57, %v745_v56  ;;  %v825_v60 = vpop.f32.mrb[33].mxu1  ;;  %v1088_v24 = vpop.f32.mrb[18].mxu0 }
 0x195   : > { %848 = vst [vmem:[%s1648_s7 + $0x40] sm:$0xff] %v818_v62  ;;  %v826_v7 = vadd.f32 %v825_v60, %v761_v21  ;;  %v821_v27 = vadd.f32 %v1088_v24, %v756_v59  ;;  %v1092_v28 = vpop.f32.mrb[34].mxu1  ;;  %v812_v29 = vpop.f32.mrb[19].mxu0 }
 0x196   : > { %860 = vst [vmem:[%s1648_s7 + $0xa0] sm:$0xff] %v834_v22  ;;  %842 = vst [vmem:[%s1648_s7 + $0x10] sm:$0xff] %v810_v23  ;;  %v837_v31 = vadd.f32 %v1092_v28, %v772_v25  ;;  %v813_v32 = vadd.f32 %v812_v29, %v748_v26  ;;  %v828_v33 = vpop.f32.mrb[35].mxu1 }
 0x197   : > { %854 = vst [vmem:[%s1648_s7 + $0x70] sm:$0xff] %v826_v7  ;;  %851 = vst [vmem:[%s1648_s7 + $0x58] sm:$0xff] %v821_v27  ;;  %v829_v16 = vadd.f32 %v828_v33, %v764_v30 }
 0x198   : > { %863 = vst [vmem:[%s1648_s7 + $0xb8] sm:$0xff] %v837_v31  ;;  %845 = vst [vmem:[%s1648_s7 + $0x28] sm:$0xff] %v813_v32 }
 0x199   : > { %857 = vst [vmem:[%s1648_s7 + $0x88] sm:$0xff] %v829_v16 }
 0x19a   : > { %1313 = shalt.err (!%p1310_p5)
}
 0x19b   : > { %s1314_s30 = scalar_lea.hbm %s1700_s27, 3072  ;;  %s1318_s20 = scalar_lea.hbm %s1759_s3, 6144 }
 0x19c   : > { %p1315_p9 = scmp.ne.s32.totalorder %s1700_s27, %s1314_s30  ;;  %p1319_p3 = scmp.lt.u32.totalorder %s1700_s27, %s1759_s3 }
 0x19d   : > { %p1320_p7 = scmp.lt.u32.totalorder %s1318_s20, %s1314_s30  ;;  %p1322_p4 = scmp.lt.u32.totalorder %s1314_s30, %s1700_s27 }
 0x19e   : > { %p1316_p1 = pnand %p1315_p9, %p1510_p10 }
 0x19f   : > { %p1321_p11 = por %p1320_p7, %p1319_p3 }
 0x1a0   : > { %p1317_p2 = pneg %p1316_p1 }
 0x1a1   : > { %p1323_p6 = por %p1322_p4, %p1321_p11 }
 0x1a3   : > { %p1324_p8 = pnand %p1323_p6, %p1317_p2 }
 0x1a5   : > { %1327 = shalt.err (!%p1324_p8)
}
 0x1a6   : > { %s1396_s7 = smov 384   ;;  %s1397_s8 = smov 24  }
 0x1a7   : > { %1152 = dma.vmem_to_hbm [thread:$0]  (%p1510_p10), %s1702_s10, 3072, %s1700_s27, %s865_s6, %s1396_s7, %s1396_s7, %s1397_s8  }
 0x1a8 PF: > { %s896_s15 = sand.u32 1, %s1366_s12   ;;  %p1776_p12 = scmp.ne.s32.totalorder %s1767_s23, 0 }
 0x1a9   : > { %p1777_p13 = scmp.ge.s32.totalorder %s1386_s17, 2  ;;  %s897_s11 = scalar_lea.sflag [#allocation4], %s896_s15 }
 0x1ab   : > { %p1163_p0 = pnand %p1777_p13, %p1776_p12 }
 0x1ad   : > { %1361 = dma.done.wait (!%p1163_p0), %s897_s11, 3072  }
 0x1ae   : > { %1363 = vsyncadd (!%p1163_p0), %s897_s11, 4294964224  ;;  %s20_s17 = sadd.s32 1, %s1386_s17   ;;  %s1778_s12 = smov %s1370_s13 }
 0x1af   : > { %p17_p5 = scmp.ge.s32.totalorder %s20_s17, 4   ;;  %s1779_s13 = smov %s1374_s14 }
 0x1b0   : > { %s1780_s14 = smov %s1519_s5  ;;  %s1781_s15 = smov %s1382_s16 }
 0x1b1   : > { %s1782_s16 = smov %s1784_s28  ;;  %19 = sbr.rel (!%p17_p5) target bundleno = 7 (0x7), region = 85 }
 0x1b8   :  { %902 = vsyncpa [#allocation3], 1 }
 0x1b9   :  { %904 = vsyncpa [#allocation3 + $0x1], 1 }
 0x1ba   :  { %905 = vsyncpa [#allocation6], 1 }
 0x1bb   :  { %906 = vsyncpa [#allocation4], 1 }
 0x1bc   :  { %908 = vsyncpa [#allocation4 + $0x1], 1 }

</bundles_post_ra>
